<compile_context>
chip_gen: v7x
topology: tpu7x:2x2x1
jax: 0.10.0
libtpu: 0.0.40
codegen_flags: <defaults>
</compile_context>

<pallas_src>
import math

import jax
import jax.numpy as jnp
from jax.experimental import pallas as pl
from jax.experimental.pallas import tpu as pltpu


def _round_up(n, m):
    return ((n + m - 1) // m) * m


def gaussnet_kernel(x_ref, p_sq_ref, p_lin_ref, w_t_ref, o_ref):
    """One batch tile of the GaussNet forward.

    x_ref:     (tb, d)              input tile (native dtype)
    p_sq_ref:  (d, width_pad)       -0.5 * scales^2, transposed
    p_lin_ref: (d, width_pad)        scales^2 * bias, transposed
    w_t_ref:   (width_pad, dd)      exp(-0.5*c) * linearOut.weight^T (zero-pad rows)
    o_ref:     (tb, dd)             output tile (final dtype)
    """
    x = x_ref[...].astype(jnp.float32)                        # (tb, d)

    # exponent[b, w] = -0.5 * sum_j s^2 x^2 + sum_j s^2 b x   (constant term
    # folded into w_t) — both reductions run on the MXU.
    acc = jnp.dot(x * x, p_sq_ref[...],
                  preferred_element_type=jnp.float32)         # (tb, W)
    acc = acc + jnp.dot(x, p_lin_ref[...],
                        preferred_element_type=jnp.float32)   # (tb, W)

    z = jnp.exp(acc)                                          # EUP, (tb, W)

    # linearOut (no bias), with the per-unit constant pre-multiplied in.
    o_ref[...] = jnp.dot(z, w_t_ref[...],
                         preferred_element_type=jnp.float32).astype(o_ref.dtype)


def _pick_tb(B, tb):
    """Batch tile: multiple of 8, <= rounded batch, and (for v7x megacore)
    small enough that the parallel grid has >= 2 steps when B allows it."""
    tb = max(8, min(tb, _round_up(B, 8)))
    if B > 8:
        tb = min(tb, _round_up((B + 1) // 2, 8))
    return tb


def gaussnet_forward(x, scales, bias, w_out, *, tb=2048):
    """x: (..., d); scales/bias: (width, d); w_out: (dd, width)."""
    d = scales.shape[1]
    width = scales.shape[0]
    dd = w_out.shape[0]

    orig_lead = x.shape[:-1]
    out_dtype = x.dtype

    x2d = x.reshape(-1, d)          # native dtype; cast to f32 happens in-kernel
    B = x2d.shape[0]

    tb = _pick_tb(B, tb)
    grid = pl.cdiv(B, tb)           # ragged last tile is masked by Pallas

    # Lane-dense padding of the Gaussian-unit axis only (intermediate (tb, W)).
    width_pad = _round_up(width, 128)

    scales32 = jnp.asarray(scales, jnp.float32)                # (width, d)
    bias32 = jnp.asarray(bias, jnp.float32)                    # (width, d)
    w32 = jnp.asarray(w_out, jnp.float32)                      # (dd, width)

    s2 = scales32 * scales32                                   # (width, d)
    p_sq = (-0.5 * s2).T                                       # (d, width)
    p_lin = (s2 * bias32).T                                    # (d, width)
    c = jnp.sum((scales32 * bias32) ** 2, axis=1)              # (width,)
    w_t = jnp.exp(-0.5 * c)[:, None] * w32.T                   # (width, dd), scaled

    # Zero-pad: padded units produce exp(0)=1 but hit zero weight rows → exact.
    p_sq = jnp.pad(p_sq, ((0, 0), (0, width_pad - width)))
    p_lin = jnp.pad(p_lin, ((0, 0), (0, width_pad - width)))
    w_t = jnp.pad(w_t, ((0, width_pad - width), (0, 0)))

    out = pl.pallas_call(
        gaussnet_kernel,
        out_shape=jax.ShapeDtypeStruct((B, dd), out_dtype),
        grid_spec=pltpu.PrefetchScalarGridSpec(
            num_scalar_prefetch=0,
            grid=(grid,),
            in_specs=[
                pl.BlockSpec((tb, d), lambda i: (i, 0)),
                # Params have constant (0, 0) block index; Mosaic keeps them
                # resident rather than re-DMAing them each grid step.
                pl.BlockSpec((d, width_pad), lambda i: (0, 0)),
                pl.BlockSpec((d, width_pad), lambda i: (0, 0)),
                pl.BlockSpec((width_pad, dd), lambda i: (0, 0)),
            ],
            out_specs=pl.BlockSpec((tb, dd), lambda i: (i, 0)),
        ),
        compiler_params=pltpu.CompilerParams(
            dimension_semantics=("parallel",),
        ),
    )(x2d, p_sq, p_lin, w_t)

    return out.reshape(orig_lead + (dd,))


def gaussnet_ref(x, scales, bias, w_out):
    """Pure-JAX reference mirroring the PyTorch forward exactly."""
    z = x[..., None, :].astype(jnp.float32)          # (..., 1, d)
    z = scales * (z - bias)                          # (..., width, d)
    z = jnp.exp(-0.5 * jnp.sum(z * z, axis=-1))      # (..., width)
    return z @ w_out.T                               # (..., dd)


if __name__ == "__main__":
    # Small shapes consistent with the module: x = (..., d)
    d, dd, width = 6, 3, 32
    batch_shape = (2, 8)          # flattened batch B = 16

    key = jax.random.PRNGKey(0)
    k_bias, k_scales, k_w, k_x = jax.random.split(key, 4)

    s = math.sqrt(1.0 / width)
    # bias / scales: 2*sqrt(1/width)*randn((width, d)) - sqrt(1/width)
    bias = 2.0 * s * jax.random.normal(k_bias, (width, d), jnp.float32) - s
    scales = 2.0 * s * jax.random.normal(k_scales, (width, d), jnp.float32) - s
    # nn.Linear(width, dd, bias=False) default init: U(-1/sqrt(width), 1/sqrt(width))
    bound = 1.0 / math.sqrt(width)
    w_out = jax.random.uniform(
        k_w, (dd, width), jnp.float32, minval=-bound, maxval=bound
    )

    x = jax.random.normal(k_x, batch_shape + (d,), jnp.float32)

    out = gaussnet_forward(x, scales, bias, w_out)
    out = jax.block_until_ready(out)

    ref = gaussnet_ref(x, scales, bias, w_out)
    assert out.shape == batch_shape + (dd,)
    assert jnp.allclose(out, ref, atol=1e-4, rtol=1e-4), (
        "Pallas output does not match reference"
    )

    print("KERNEL_OK")
</pallas_src>

<mosaic_0001>
module attributes {stable_mosaic.version = 11 : i64} {
  func.func @gaussnet_kernel(%arg0: i32, %arg1: memref<8x6xf32, #tpu.memory_space<vmem>>, %arg2: memref<6x128xf32, #tpu.memory_space<vmem>>, %arg3: memref<6x128xf32, #tpu.memory_space<vmem>>, %arg4: memref<128x3xf32, #tpu.memory_space<vmem>>, %arg5: memref<8x3xf32, #tpu.memory_space<vmem>>) attributes {dimension_semantics = [#tpu.dimension_semantics<parallel>], iteration_bounds = array<i64: 2>, scalar_prefetch = 0 : i64, scratch_operands = 0 : i64, tpu.core_type = #tpu.core_type<tc>, window_params = [{transform_indices = @transform_0, window_bounds = array<i64: 8, 6>}, {pipeline_mode = #tpu.pipeline_mode<synchronous>, transform_indices = @transform_1, window_bounds = array<i64: 6, 128>}, {pipeline_mode = #tpu.pipeline_mode<synchronous>, transform_indices = @transform_2, window_bounds = array<i64: 6, 128>}, {pipeline_mode = #tpu.pipeline_mode<synchronous>, transform_indices = @transform_3, window_bounds = array<i64: 128, 3>}, {transform_indices = @transform_4, window_bounds = array<i64: 8, 3>}]} {
    %c0 = arith.constant 0 : index
    %c0_0 = arith.constant 0 : index
    %0 = vector.load %arg1[%c0, %c0_0] : memref<8x6xf32, #tpu.memory_space<vmem>>, vector<8x6xf32>
    %1 = arith.mulf %0, %0 : vector<8x6xf32>
    %c0_1 = arith.constant 0 : index
    %c0_2 = arith.constant 0 : index
    %2 = vector.load %arg2[%c0_1, %c0_2] : memref<6x128xf32, #tpu.memory_space<vmem>>, vector<6x128xf32>
    %cst = arith.constant dense<0.000000e+00> : vector<8x128xf32>
    %3 = tpu.matmul %1, %2, %cst {dimension_numbers = #tpu.dot_dimension_numbers<[1], [0], [0], [1], [0, 0, 1, 1], [], []>} : vector<8x6xf32>, vector<6x128xf32>, vector<8x128xf32> -> vector<8x128xf32>
    %c0_3 = arith.constant 0 : index
    %c0_4 = arith.constant 0 : index
    %4 = vector.load %arg3[%c0_3, %c0_4] : memref<6x128xf32, #tpu.memory_space<vmem>>, vector<6x128xf32>
    %cst_5 = arith.constant dense<0.000000e+00> : vector<8x128xf32>
    %5 = tpu.matmul %0, %4, %cst_5 {dimension_numbers = #tpu.dot_dimension_numbers<[1], [0], [0], [1], [0, 0, 1, 1], [], []>} : vector<8x6xf32>, vector<6x128xf32>, vector<8x128xf32> -> vector<8x128xf32>
    %6 = arith.addf %3, %5 : vector<8x128xf32>
    %7 = math.exp %6 : vector<8x128xf32>
    %c0_6 = arith.constant 0 : index
    %c0_7 = arith.constant 0 : index
    %8 = vector.load %arg4[%c0_6, %c0_7] : memref<128x3xf32, #tpu.memory_space<vmem>>, vector<128x3xf32>
    %cst_8 = arith.constant dense<0.000000e+00> : vector<8x3xf32>
    %9 = tpu.matmul %7, %8, %cst_8 {dimension_numbers = #tpu.dot_dimension_numbers<[1], [0], [0], [1], [0, 0, 1, 1], [], []>} : vector<8x128xf32>, vector<128x3xf32>, vector<8x3xf32> -> vector<8x3xf32>
    %c0_9 = arith.constant 0 : index
    %c0_10 = arith.constant 0 : index
    %10 = vector.load %arg5[%c0_9, %c0_10] : memref<8x3xf32, #tpu.memory_space<vmem>>, vector<8x3xf32>
    tpu.vector_store %arg5[%c0_9, %c0_10], %9 {strides = array<i32>} : memref<8x3xf32, #tpu.memory_space<vmem>>, vector<8x3xf32>,
    return
  }
  func.func @transform_0(%arg0: i32) -> (i32, i32) {
    %c0_i32 = arith.constant 0 : i32
    %c0_i32_0 = arith.constant 0 : i32
    return %arg0, %c0_i32 : i32, i32
  }
  func.func @transform_1(%arg0: i32) -> (i32, i32) {
    %c0_i32 = arith.constant 0 : i32
    %c0_i32_0 = arith.constant 0 : i32
    %c0_i32_1 = arith.constant 0 : i32
    return %c0_i32, %c0_i32_0 : i32, i32
  }
  func.func @transform_2(%arg0: i32) -> (i32, i32) {
    %c0_i32 = arith.constant 0 : i32
    %c0_i32_0 = arith.constant 0 : i32
    %c0_i32_1 = arith.constant 0 : i32
    return %c0_i32, %c0_i32_0 : i32, i32
  }
  func.func @transform_3(%arg0: i32) -> (i32, i32) {
    %c0_i32 = arith.constant 0 : i32
    %c0_i32_0 = arith.constant 0 : i32
    %c0_i32_1 = arith.constant 0 : i32
    return %c0_i32, %c0_i32_0 : i32, i32
  }
  func.func @transform_4(%arg0: i32) -> (i32, i32) {
    %c0_i32 = arith.constant 0 : i32
    %c0_i32_0 = arith.constant 0 : i32
    return %arg0, %c0_i32 : i32, i32
  }
}

</mosaic_0001>

<bundles_post_ra>
// kernel: tpu_custom_call.1
= control target key start
LH: loop header
LB: loop body
LE: loop exit
PB: predicated region body
PF: predicated region fallthrough
CT: control target
= control target key end

     0   :  { %s648_s15 = smov 0   ;;  %s733_s0 = inlined_call_operand.vmem [shape: f32[16,6], index: 0, kind: input, shape index: {}]   ;;  %s734_s1 = inlined_call_operand.vmem [shape: f32[6,128], index: 1, kind: input, shape index: {}]   ;;  %s735_s2 = inlined_call_operand.vmem [shape: f32[6,128], index: 2, kind: input, shape index: {}]   ;;  %s736_s3 = inlined_call_operand.vmem [shape: f32[128,3], index: 3, kind: input, shape index: {}]   ;;  %s737_s4 = inlined_call_operand.vmem [shape: f32[16,3], index: 4, kind: output, shape index: {}]  }
   0x1 LB: > { %s494_s16 = sadd.s32 4294967295, %s618_s15   ;;  %p498_p0 = scmp.ge.s32.totalorder %s618_s15, 1  ;;  %s618_s15 = sphi %s648_s15, %s14_s15  }
   0x2   : > { %p161_p1 = scmp.lt.s32.totalorder %s618_s15, 3 }
   0x4   : > { %p162_p2 = pnand %p498_p0, %p161_p1 }
   0x5   : > { %v196_v0 = vld [vmem:[%s735_s2] sm:$0x3f] (!%p162_p2)  ;;  %vm201_vm0 = vcmask (!%p162_p2), 1045504   ;;  %p185_p3 = scmp.lt.s32.totalorder (!%p162_p2), %s494_s16, 1  ;;  %v620_v1 = vmov (!%p162_p2), 0.0   ;;  %vm621_vm1 = vmmov (!%p162_p2), 0  }
   0x6   : > { %165 = sbr.rel (%p162_p2) target bundleno = 463 (0x1cf), region = 36  ;;  %528 = vmatprep.subr.mxu0 (!%p162_p2), %v620_v1  ;;  %530 = vmatprep.mubr.msk.f32.mxu0 (!%p162_p2), %vm621_vm1, %v620_v1  ;;  %v353_v2 = vld [vmem:[%s736_s3] sm:$0xff] (!%p162_p2)  ;;  %v354_v3 = vld [vmem:[%s736_s3 + $0x8] sm:$0xff] (!%p162_p2)  ;;  %v622_v4 = vmov (!%p162_p2), 0.0|0.0   ;;  %v355_v6 = vld [vmem:[%s736_s3 + $0x10] sm:$0xff] (!%p162_p2)  ;;  %vm197_vm2 = vcmask (!%p162_p2), 48128  }
   0x7   : > { %529 = vmatpush3.msk.msra.mxu0 (!%p162_p2), %vm201_vm0, %v196_v0  ;;  %573 = vmatprep.subr.bf16.mxu1 (!%p162_p2), %v622_v4  ;;  %v574_v5 = vpack.c.bf16 (!%p162_p2), %v354_v3, %v353_v2  ;;  %v356_v7 = vld [vmem:[%s736_s3 + $0x18] sm:$0xff] (!%p162_p2)  ;;  %v195_v8 = vld [vmem:[%s734_s1] sm:$0x3f] (!%p162_p2)  ;;  %v358_v12 = vld [vmem:[%s736_s3 + $0x28] sm:$0xff] (!%p162_p2)  ;;  %vm439_vm3 = vcmask (!%p162_p2), 23552  }
   0x8   : > { %533 = vmatprep.subr.mxu0 (!%p162_p2), %v620_v1  ;;  %570 = vmatprep.mubr.msk.f32.mxu1 (!%p162_p2), %vm621_vm1, %v620_v1  ;;  %v577_v9 = vpack.c.bf16 (!%p162_p2), %v356_v7, %v355_v6  ;;  %v357_v11 = vld [vmem:[%s736_s3 + $0x20] sm:$0xff] (!%p162_p2)  ;;  %v359_v14 = vld [vmem:[%s736_s3 + $0x30] sm:$0xff] (!%p162_p2)  ;;  %v360_v15 = vld [vmem:[%s736_s3 + $0x38] sm:$0xff] (!%p162_p2) }
   0x9   : > { %575 = vmatpush3.bf16.msra.mxu1 (!%p162_p2), %v574_v5  ;;  %v580_v13 = vpack.c.bf16 (!%p162_p2), %v358_v12, %v357_v11  ;;  %v583_v17 = vpack.c.bf16 (!%p162_p2), %v360_v15, %v359_v14  ;;  %v361_v18 = vld [vmem:[%s736_s3 + $0x40] sm:$0xff] (!%p162_p2)  ;;  %v362_v19 = vld [vmem:[%s736_s3 + $0x48] sm:$0xff] (!%p162_p2)  ;;  %v363_v21 = vld [vmem:[%s736_s3 + $0x50] sm:$0xff] (!%p162_p2) }
   0xa   : > { %576 = vmatprep.subr.bf16.mxu1 (!%p162_p2), %v622_v4  ;;  %v586_v20 = vpack.c.bf16 (!%p162_p2), %v362_v19, %v361_v18  ;;  %v364_v22 = vld [vmem:[%s736_s3 + $0x58] sm:$0xff] (!%p162_p2)  ;;  %v365_v24 = vld [vmem:[%s736_s3 + $0x60] sm:$0xff] (!%p162_p2)  ;;  %v366_v25 = vld [vmem:[%s736_s3 + $0x68] sm:$0xff] (!%p162_p2) }
   0xb   : > { %v589_v23 = vpack.c.bf16 (!%p162_p2), %v364_v22, %v363_v21  ;;  %v592_v26 = vpack.c.bf16 (!%p162_p2), %v366_v25, %v365_v24  ;;  %v367_v27 = vld [vmem:[%s736_s3 + $0x70] sm:$0xff] (!%p162_p2)  ;;  %v368_v28 = vld [vmem:[%s736_s3 + $0x78] sm:$0xff] (!%p162_p2) }
   0xc   : > { %v595_v29 = vpack.c.bf16 (!%p162_p2), %v368_v28, %v367_v27 }
   0xd   : > { %s739_s16 = smov (!%p185_p3, %s494_s16), 1  ;;  %578 = vmatpush3.bf16.msra.mxu1 %v577_v9 }
   0xe   : > { %s499_s27 = sshll.u32 %s739_s16, 3  ;;  %579 = vmatprep.subr.bf16.mxu1 %v622_v4 }
   0xf   : > { %s188_s30 = scalar_lea.vmem %s733_s0, %s499_s27  ;;  %s192_s10 = scalar_lea.vmem %s737_s4, %s499_s27 }
  0x10   : > { %v193_v10 = vld [vmem:[%s188_s30] sm:$0xff] }
  0x11   : > { %531 = vmatmul.mubr.msk.f32.vlgmr.msra.gmra.mrb[0].mxu0 %vm197_vm2, %v193_v10  ;;  %v194_v16 = vmul.f32 %v193_v10, %v193_v10  ;;  %581 = vmatpush3.bf16.msra.mxu1 %v580_v13 }
  0x12   : > { %534 = vmatpush3.msk.msra.mxu0 %vm201_vm0, %v195_v8  ;;  %535 = vmatprep.mubr.msk.f32.mxu0 %vm621_vm1, %v620_v1 }
  0x13   : > { %582 = vmatprep.subr.bf16.mxu1 %v622_v4 }
  0x15   : > { %584 = vmatpush3.bf16.msra.mxu1 %v583_v17 }
  0x16   : > { %585 = vmatprep.subr.bf16.mxu1 %v622_v4 }
  0x19   : > { %536 = vmatmul.mubr.msk.f32.vlgmr.msra.gmra.mrb[0].mxu0 %vm197_vm2, %v194_v16  ;;  %587 = vmatpush3.bf16.msra.mxu1 %v586_v20 }
  0x1a   : > { %588 = vmatprep.subr.bf16.mxu1 %v622_v4 }
  0x1d   : > { %590 = vmatpush3.bf16.msra.mxu1 %v589_v23 }
  0x1e   : > { %591 = vmatprep.subr.bf16.mxu1 %v622_v4 }
  0x21   : > { %593 = vmatpush3.bf16.msra.mxu1 %v592_v26 }
  0x22   : > { %594 = vmatprep.subr.bf16.mxu1 %v622_v4 }
  0x25   : > { %596 = vmatpush3.bf16.msra.mxu1 %v595_v29 }
  0xec   : > { %v347_v30 = vpop.f32.mrb[0].mxu0 }
  0xed   : > { %v351_v31 = vmul.f32 1.442695, %v347_v30  ;;  %v537_v32 = vpop.f32.mrb[1].mxu0 }
  0xef   : > { %610 = vpow2.f32 %v351_v31 }
  0xf9   : > { %v611_v33 = vpop.eup %610 }
  0xfa   : > { %571 = vmatmul.mubr.f32.vlgmr.msra.gmra.mrb[0].mxu1 %v611_v33 }
 0x1cd   : > { %v435_v34 = vpop.f32.mrb[0].mxu1 }
 0x1ce   : > { %440 = vst.msk [vmem:[%s192_s10] sm:$0xff] %vm439_vm3, %v435_v34  ;;  %v572_v35 = vpop.f32.mrb[1].mxu1 }
 0x1cf PF: > { %s14_s15 = sadd.s32 1, %s618_s15  }
 0x1d0   : > { %p11_p4 = scmp.ge.s32.totalorder %s14_s15, 4  }
 0x1d2   :  { %13 = sbr.rel (!%p11_p4) target bundleno = 1 (0x1), region = 66 }

</bundles_post_ra>
